<compile_context>
chip_gen: v7x
topology: tpu7x:2x2x1
jax: 0.10.0
libtpu: 0.0.40
codegen_flags: <defaults>
</compile_context>

<pallas_src>
import math

import jax
import jax.numpy as jnp
from jax.experimental import pallas as pl
from jax.experimental.pallas import tpu as pltpu

_LANE = 128


def _round_up(x, m):
    return ((x + m - 1) // m) * m


def _mlp_kernel(z_ref, w1_ref, b1_ref, w2_ref, b2_ref, w3_ref, b3_ref, o_ref):
    # Layer 1: Linear + (Dropout = identity in eval) + ReLU, fused epilogue -> bf16.
    z_bf = z_ref[...].astype(jnp.bfloat16)          # cast in-kernel; no wrapper HBM pass
    h1 = jnp.dot(z_bf, w1_ref[...], preferred_element_type=jnp.float32)
    h1_bf = jnp.maximum(h1 + b1_ref[...], 0.0).astype(jnp.bfloat16)

    # Layer 2: Linear + (Dropout = identity in eval).
    h2 = jnp.dot(h1_bf, w2_ref[...], preferred_element_type=jnp.float32) + b2_ref[...]

    # Layer 3: Linear.
    out = jnp.dot(h2.astype(jnp.bfloat16), w3_ref[...],
                  preferred_element_type=jnp.float32) + b3_ref[...]
    o_ref[...] = out.astype(o_ref.dtype)


def prepare_p_net_params(params):
    """Zero-pad output feature dims to multiples of 128 and cast weights to bf16.

    Padding is mathematically exact: padded weight cols/rows and bias entries are zero
    and padded output columns are sliced off in the wrapper.  The z (contracting) dim of
    w1 is left unpadded so z itself needs no feature padding.
    """
    z_dim, N = params["w1"].shape
    x_dim = params["w3"].shape[1]
    Np, Xp = _round_up(N, _LANE), _round_up(x_dim, _LANE)

    def pad2(a, r, c):
        return jnp.pad(a, ((0, r - a.shape[0]), (0, c - a.shape[1])))

    return {
        "w1": pad2(params["w1"], z_dim, Np).astype(jnp.bfloat16),
        "b1": pad2(params["b1"], 1, Np).astype(jnp.float32),
        "w2": pad2(params["w2"], Np, Np).astype(jnp.bfloat16),
        "b2": pad2(params["b2"], 1, Np).astype(jnp.float32),
        "w3": pad2(params["w3"], Np, Xp).astype(jnp.bfloat16),
        "b3": pad2(params["b3"], 1, Xp).astype(jnp.float32),
        "dims": (z_dim, N, x_dim, Np, Xp),
    }


def _vmem_capacity_bytes():
    try:
        return int(pltpu.get_tpu_info().vmem_capacity_bytes)
    except Exception:
        return 64 * 2**20  # conservative (v7x-sized) fallback


def _weight_bytes(z_dim, Np, Xp):
    return (z_dim * Np + Np * Np + Np * Xp) * 2 + (2 * Np + Xp) * 4


def _vmem_budget(tile_b, z_dim, Np, Xp):
    w = _weight_bytes(z_dim, Np, Xp)                       # single-buffered resident weights
    io = 2 * tile_b * z_dim * 4 + 2 * tile_b * Xp * 4      # double-buffered z / out tiles
    inter = tile_b * (z_dim * 2                            # bf16 copy of z
                      + Np * (4 + 2) * 2                   # h1 / h2 in f32 + bf16
                      + Xp * 4)                            # f32 out before cast
    return w + io + inter


def _choose_tile_b(B, z_dim, Np, Xp, vmem_cap):
    # Small hidden size -> per-step work is tiny and overhead-bound; use big batch tiles.
    tile_cap = 4096 if max(Np, Xp) <= 256 else 512
    # Keep >= 2 grid steps for larger batches so a v7x megacore's 2nd TC gets work.
    min_steps = 2 if B > 256 else 1
    tile_b = max(16, min(tile_cap, _round_up(pl.cdiv(B, min_steps), 16)))
    while tile_b > 16 and _vmem_budget(tile_b, z_dim, Np, Xp) > vmem_cap:
        tile_b = max(16, _round_up(tile_b // 2, 16))
    return tile_b


def _build_call(tile_b, grid, z_dim, Np, Xp, Bp, vmem_limit, flops, bytes_accessed,
                single_buffer_weights=True):
    resident_kwargs = {}
    if single_buffer_weights:
        # Constant index_map => same block every grid step; one VMEM buffer suffices.
        resident_kwargs = dict(pipeline_mode=pl.Buffered(1))

    def resident(shape):
        return pl.BlockSpec(shape, lambda i: (0, 0), **resident_kwargs)

    return pl.pallas_call(
        _mlp_kernel,
        out_shape=jax.ShapeDtypeStruct((Bp, Xp), jnp.float32),
        grid_spec=pltpu.PrefetchScalarGridSpec(
            num_scalar_prefetch=0,
            grid=grid,
            in_specs=[
                pl.BlockSpec((tile_b, z_dim), lambda i: (i, 0)),   # z tile streams
                resident((z_dim, Np)), resident((1, Np)),
                resident((Np, Np)), resident((1, Np)),
                resident((Np, Xp)), resident((1, Xp)),
            ],
            out_specs=pl.BlockSpec((tile_b, Xp), lambda i: (i, 0)),
        ),
        compiler_params=pltpu.CompilerParams(
            dimension_semantics=("parallel",),
            vmem_limit_bytes=vmem_limit,
        ),
        cost_estimate=pl.CostEstimate(
            flops=flops, transcendentals=0, bytes_accessed=bytes_accessed),
    )


def p_net_forward(z, prepped):
    """Fused 3-layer MLP decoder (eval-mode dropout) on TPU via Pallas.

    z:       [B, z_dim] float32
    prepped: output of prepare_p_net_params
    returns  [B, x_dim] float32
    """
    z_dim, N, x_dim, Np, Xp = prepped["dims"]
    B = z.shape[0]

    vmem_cap = int(0.85 * _vmem_capacity_bytes())   # leave headroom for compiler scratch
    tile_b = _choose_tile_b(B, z_dim, Np, Xp, vmem_cap)
    Bp = _round_up(B, tile_b)
    grid = (Bp // tile_b,)

    # z stays f32 (cast to bf16 in-kernel); pad batch rows only when tiling requires it.
    z_p = z if Bp == B else jnp.pad(z, ((0, Bp - B), (0, 0)))

    flops = 2 * Bp * (z_dim * Np + Np * Np + Np * Xp)
    bytes_accessed = Bp * z_dim * 4 + Bp * Xp * 4 + _weight_bytes(z_dim, Np, Xp)

    budget = _vmem_budget(tile_b, z_dim, Np, Xp)
    vmem_limit = int(min(vmem_cap, max(32 * 2**20, int(1.25 * budget))))
    # TODO(synk): if bf16 w2 stops fitting resident (Np ~ 4-5k on v7x's 64 MiB VMEM),
    # K-tile layer 2 over an extra 'arbitrary' grid axis with an f32 VMEM accumulator.

    args = (z_p,
            prepped["w1"], prepped["b1"],
            prepped["w2"], prepped["b2"],
            prepped["w3"], prepped["b3"])
    try:
        out_p = _build_call(tile_b, grid, z_dim, Np, Xp, Bp, vmem_limit,
                            flops, bytes_accessed, single_buffer_weights=True)(*args)
    except Exception:
        # Fallback if this JAX build rejects pipeline_mode on the top-level grid pipeline.
        out_p = _build_call(tile_b, grid, z_dim, Np, Xp, Bp, vmem_limit,
                            flops, bytes_accessed, single_buffer_weights=False)(*args)
    return out_p[:B, :x_dim]


def init_p_net_params(key, z_dim, N, x_dim):
    """Deterministic init mimicking PyTorch nn.Linear default (uniform +/- 1/sqrt(fan_in))."""
    keys = jax.random.split(key, 6)

    def lin(kw, kb, fan_in, fan_out):
        bound = 1.0 / math.sqrt(fan_in)
        w = jax.random.uniform(kw, (fan_in, fan_out), jnp.float32, -bound, bound)
        b = jax.random.uniform(kb, (1, fan_out), jnp.float32, -bound, bound)
        return w, b

    w1, b1 = lin(keys[0], keys[1], z_dim, N)
    w2, b2 = lin(keys[2], keys[3], N, N)
    w3, b3 = lin(keys[4], keys[5], N, x_dim)
    return {"w1": w1, "b1": b1, "w2": w2, "b2": b2, "w3": w3, "b3": b3}


if __name__ == "__main__":
    # Small shapes consistent with the module: N=hidden, x_dim=output, z_dim=latent.
    B, z_dim, N, x_dim = 8, 16, 32, 64

    key = jax.random.PRNGKey(0)
    k_params, k_z = jax.random.split(key)
    params = init_p_net_params(k_params, z_dim, N, x_dim)
    z = jax.random.normal(k_z, (B, z_dim), jnp.float32)

    prepped = prepare_p_net_params(params)
    out = p_net_forward(z, prepped)
    jax.block_until_ready(out)
    assert out.shape == (B, x_dim)

    # Reference 1: same bf16-operand / f32-accumulate path as the kernel (tight).
    def bf(x):
        return x.astype(jnp.bfloat16).astype(jnp.float32)

    h1 = jnp.maximum(bf(z) @ bf(params["w1"]) + params["b1"], 0.0)
    h2 = bf(h1) @ bf(params["w2"]) + params["b2"]
    ref_bf16 = bf(h2) @ bf(params["w3"]) + params["b3"]
    assert jnp.allclose(out, ref_bf16, atol=1e-3, rtol=1e-3)

    # Reference 2: full-f32 math (loose; bounds the bf16 rounding error).
    h1f = jnp.maximum(z @ params["w1"] + params["b1"], 0.0)
    ref_f32 = (h1f @ params["w2"] + params["b2"]) @ params["w3"] + params["b3"]
    assert jnp.allclose(out, ref_f32, atol=5e-2, rtol=5e-2)

    print("KERNEL_OK")
</pallas_src>

<mosaic_0001>
module attributes {stable_mosaic.version = 11 : i64} {
  func.func @_mlp_kernel(%arg0: i32, %arg1: memref<16x16xf32, #tpu.memory_space<vmem>>, %arg2: memref<16x128xbf16, #tpu.memory_space<vmem>>, %arg3: memref<1x128xf32, #tpu.memory_space<vmem>>, %arg4: memref<128x128xbf16, #tpu.memory_space<vmem>>, %arg5: memref<1x128xf32, #tpu.memory_space<vmem>>, %arg6: memref<128x128xbf16, #tpu.memory_space<vmem>>, %arg7: memref<1x128xf32, #tpu.memory_space<vmem>>, %arg8: memref<16x128xf32, #tpu.memory_space<vmem>>) attributes {dimension_semantics = [#tpu.dimension_semantics<parallel>], iteration_bounds = array<i64: 1>, scalar_prefetch = 0 : i64, scratch_operands = 0 : i64, tpu.core_type = #tpu.core_type<tc>, window_params = [{transform_indices = @transform_0, window_bounds = array<i64: 16, 16>}, {pipeline_mode = #tpu.pipeline_mode<synchronous>, transform_indices = @transform_1, window_bounds = array<i64: 16, 128>}, {pipeline_mode = #tpu.pipeline_mode<synchronous>, transform_indices = @transform_2, window_bounds = array<i64: 1, 128>}, {pipeline_mode = #tpu.pipeline_mode<synchronous>, transform_indices = @transform_3, window_bounds = array<i64: 128, 128>}, {pipeline_mode = #tpu.pipeline_mode<synchronous>, transform_indices = @transform_4, window_bounds = array<i64: 1, 128>}, {pipeline_mode = #tpu.pipeline_mode<synchronous>, transform_indices = @transform_5, window_bounds = array<i64: 128, 128>}, {pipeline_mode = #tpu.pipeline_mode<synchronous>, transform_indices = @transform_6, window_bounds = array<i64: 1, 128>}, {transform_indices = @transform_7, window_bounds = array<i64: 16, 128>}]} {
    %c0 = arith.constant 0 : index
    %c0_0 = arith.constant 0 : index
    %0 = vector.load %arg1[%c0, %c0_0] : memref<16x16xf32, #tpu.memory_space<vmem>>, vector<16x16xf32>
    %1 = arith.truncf %0 : vector<16x16xf32> to vector<16x16xbf16>
    %c0_1 = arith.constant 0 : index
    %c0_2 = arith.constant 0 : index
    %2 = vector.load %arg2[%c0_1, %c0_2] : memref<16x128xbf16, #tpu.memory_space<vmem>>, vector<16x128xbf16>
    %cst = arith.constant dense<0.000000e+00> : vector<16x128xf32>
    %3 = tpu.matmul %1, %2, %cst {dimension_numbers = #tpu.dot_dimension_numbers<[1], [0], [0], [1], [0, 0, 1, 1], [], []>} : vector<16x16xbf16>, vector<16x128xbf16>, vector<16x128xf32> -> vector<16x128xf32>
    %c0_3 = arith.constant 0 : index
    %c0_4 = arith.constant 0 : index
    %4 = vector.load %arg3[%c0_3, %c0_4] : memref<1x128xf32, #tpu.memory_space<vmem>>, vector<1x128xf32>
    %5 = vector.broadcast %4 : vector<1x128xf32> to vector<16x128xf32>
    %6 = arith.addf %3, %5 : vector<16x128xf32>
    %cst_5 = arith.constant 0.000000e+00 : f32
    %7 = vector.broadcast %cst_5 : f32 to vector<16x128xf32>
    %8 = arith.maximumf %6, %7 : vector<16x128xf32>
    %9 = arith.truncf %8 : vector<16x128xf32> to vector<16x128xbf16>
    %c0_6 = arith.constant 0 : index
    %c0_7 = arith.constant 0 : index
    %10 = vector.load %arg4[%c0_6, %c0_7] : memref<128x128xbf16, #tpu.memory_space<vmem>>, vector<128x128xbf16>
    %cst_8 = arith.constant dense<0.000000e+00> : vector<16x128xf32>
    %11 = tpu.matmul %9, %10, %cst_8 {dimension_numbers = #tpu.dot_dimension_numbers<[1], [0], [0], [1], [0, 0, 1, 1], [], []>} : vector<16x128xbf16>, vector<128x128xbf16>, vector<16x128xf32> -> vector<16x128xf32>
    %c0_9 = arith.constant 0 : index
    %c0_10 = arith.constant 0 : index
    %12 = vector.load %arg5[%c0_9, %c0_10] : memref<1x128xf32, #tpu.memory_space<vmem>>, vector<1x128xf32>
    %13 = vector.broadcast %12 : vector<1x128xf32> to vector<16x128xf32>
    %14 = arith.addf %11, %13 : vector<16x128xf32>
    %15 = arith.truncf %14 : vector<16x128xf32> to vector<16x128xbf16>
    %c0_11 = arith.constant 0 : index
    %c0_12 = arith.constant 0 : index
    %16 = vector.load %arg6[%c0_11, %c0_12] : memref<128x128xbf16, #tpu.memory_space<vmem>>, vector<128x128xbf16>
    %cst_13 = arith.constant dense<0.000000e+00> : vector<16x128xf32>
    %17 = tpu.matmul %15, %16, %cst_13 {dimension_numbers = #tpu.dot_dimension_numbers<[1], [0], [0], [1], [0, 0, 1, 1], [], []>} : vector<16x128xbf16>, vector<128x128xbf16>, vector<16x128xf32> -> vector<16x128xf32>
    %c0_14 = arith.constant 0 : index
    %c0_15 = arith.constant 0 : index
    %18 = vector.load %arg7[%c0_14, %c0_15] : memref<1x128xf32, #tpu.memory_space<vmem>>, vector<1x128xf32>
    %19 = vector.broadcast %18 : vector<1x128xf32> to vector<16x128xf32>
    %20 = arith.addf %17, %19 : vector<16x128xf32>
    %c0_16 = arith.constant 0 : index
    %c0_17 = arith.constant 0 : index
    %21 = vector.load %arg8[%c0_16, %c0_17] : memref<16x128xf32, #tpu.memory_space<vmem>>, vector<16x128xf32>
    tpu.vector_store %arg8[%c0_16, %c0_17], %20 {strides = array<i32>} : memref<16x128xf32, #tpu.memory_space<vmem>>, vector<16x128xf32>,
    return
  }
  func.func @transform_0(%arg0: i32) -> (i32, i32) {
    %c0_i32 = arith.constant 0 : i32
    %c0_i32_0 = arith.constant 0 : i32
    return %arg0, %c0_i32 : i32, i32
  }
  func.func @transform_1(%arg0: i32) -> (i32, i32) {
    %c0_i32 = arith.constant 0 : i32
    %c0_i32_0 = arith.constant 0 : i32
    %c0_i32_1 = arith.constant 0 : i32
    return %c0_i32, %c0_i32_0 : i32, i32
  }
  func.func @transform_2(%arg0: i32) -> (i32, i32) {
    %c0_i32 = arith.constant 0 : i32
    %c0_i32_0 = arith.constant 0 : i32
    %c0_i32_1 = arith.constant 0 : i32
    return %c0_i32, %c0_i32_0 : i32, i32
  }
  func.func @transform_3(%arg0: i32) -> (i32, i32) {
    %c0_i32 = arith.constant 0 : i32
    %c0_i32_0 = arith.constant 0 : i32
    %c0_i32_1 = arith.constant 0 : i32
    return %c0_i32, %c0_i32_0 : i32, i32
  }
  func.func @transform_4(%arg0: i32) -> (i32, i32) {
    %c0_i32 = arith.constant 0 : i32
    %c0_i32_0 = arith.constant 0 : i32
    %c0_i32_1 = arith.constant 0 : i32
    return %c0_i32, %c0_i32_0 : i32, i32
  }
  func.func @transform_5(%arg0: i32) -> (i32, i32) {
    %c0_i32 = arith.constant 0 : i32
    %c0_i32_0 = arith.constant 0 : i32
    %c0_i32_1 = arith.constant 0 : i32
    return %c0_i32, %c0_i32_0 : i32, i32
  }
  func.func @transform_6(%arg0: i32) -> (i32, i32) {
    %c0_i32 = arith.constant 0 : i32
    %c0_i32_0 = arith.constant 0 : i32
    %c0_i32_1 = arith.constant 0 : i32
    return %c0_i32, %c0_i32_0 : i32, i32
  }
  func.func @transform_7(%arg0: i32) -> (i32, i32) {
    %c0_i32 = arith.constant 0 : i32
    %c0_i32_0 = arith.constant 0 : i32
    return %arg0, %c0_i32 : i32, i32
  }
}

module attributes {stable_mosaic.version = 11 : i64} {
  func.func @_mlp_kernel(%arg0: i32, %arg1: memref<16x16xf32, #tpu.memory_space<vmem>>, %arg2: memref<16x128xbf16, #tpu.memory_space<vmem>>, %arg3: memref<1x128xf32, #tpu.memory_space<vmem>>, %arg4: memref<128x128xbf16, #tpu.memory_space<vmem>>, %arg5: memref<1x128xf32, #tpu.memory_space<vmem>>, %arg6: memref<128x128xbf16, #tpu.memory_space<vmem>>, %arg7: memref<1x128xf32, #tpu.memory_space<vmem>>, %arg8: memref<16x128xf32, #tpu.memory_space<vmem>>) attributes {dimension_semantics = [#tpu.dimension_semantics<parallel>], iteration_bounds = array<i64: 1>, scalar_prefetch = 0 : i64, scratch_operands = 0 : i64, tpu.core_type = #tpu.core_type<tc>, window_params = [{transform_indices = @transform_0, window_bounds = array<i64: 16, 16>}, {pipeline_mode = #tpu.pipeline_mode<synchronous>, transform_indices = @transform_1, window_bounds = array<i64: 16, 128>}, {pipeline_mode = #tpu.pipeline_mode<synchronous>, transform_indices = @transform_2, window_bounds = array<i64: 1, 128>}, {pipeline_mode = #tpu.pipeline_mode<synchronous>, transform_indices = @transform_3, window_bounds = array<i64: 128, 128>}, {pipeline_mode = #tpu.pipeline_mode<synchronous>, transform_indices = @transform_4, window_bounds = array<i64: 1, 128>}, {pipeline_mode = #tpu.pipeline_mode<synchronous>, transform_indices = @transform_5, window_bounds = array<i64: 128, 128>}, {pipeline_mode = #tpu.pipeline_mode<synchronous>, transform_indices = @transform_6, window_bounds = array<i64: 1, 128>}, {transform_indices = @transform_7, window_bounds = array<i64: 16, 128>}]} {
    %c0 = arith.constant 0 : index
    %c0_0 = arith.constant 0 : index
    %0 = vector.load %arg1[%c0, %c0_0] : memref<16x16xf32, #tpu.memory_space<vmem>>, vector<16x16xf32>
    %1 = arith.truncf %0 : vector<16x16xf32> to vector<16x16xbf16>
    %c0_1 = arith.constant 0 : index
    %c0_2 = arith.constant 0 : index
    %2 = vector.load %arg2[%c0_1, %c0_2] : memref<16x128xbf16, #tpu.memory_space<vmem>>, vector<16x128xbf16>
    %cst = arith.constant dense<0.000000e+00> : vector<16x128xf32>
    %3 = tpu.matmul %1, %2, %cst {dimension_numbers = #tpu.dot_dimension_numbers<[1], [0], [0], [1], [0, 0, 1, 1], [], []>} : vector<16x16xbf16>, vector<16x128xbf16>, vector<16x128xf32> -> vector<16x128xf32>
    %c0_3 = arith.constant 0 : index
    %c0_4 = arith.constant 0 : index
    %4 = vector.load %arg3[%c0_3, %c0_4] : memref<1x128xf32, #tpu.memory_space<vmem>>, vector<1x128xf32>
    %5 = vector.broadcast %4 : vector<1x128xf32> to vector<16x128xf32>
    %6 = arith.addf %3, %5 : vector<16x128xf32>
    %cst_5 = arith.constant 0.000000e+00 : f32
    %7 = vector.broadcast %cst_5 : f32 to vector<16x128xf32>
    %8 = arith.maximumf %6, %7 : vector<16x128xf32>
    %9 = arith.truncf %8 : vector<16x128xf32> to vector<16x128xbf16>
    %c0_6 = arith.constant 0 : index
    %c0_7 = arith.constant 0 : index
    %10 = vector.load %arg4[%c0_6, %c0_7] : memref<128x128xbf16, #tpu.memory_space<vmem>>, vector<128x128xbf16>
    %cst_8 = arith.constant dense<0.000000e+00> : vector<16x128xf32>
    %11 = tpu.matmul %9, %10, %cst_8 {dimension_numbers = #tpu.dot_dimension_numbers<[1], [0], [0], [1], [0, 0, 1, 1], [], []>} : vector<16x128xbf16>, vector<128x128xbf16>, vector<16x128xf32> -> vector<16x128xf32>
    %c0_9 = arith.constant 0 : index
    %c0_10 = arith.constant 0 : index
    %12 = vector.load %arg5[%c0_9, %c0_10] : memref<1x128xf32, #tpu.memory_space<vmem>>, vector<1x128xf32>
    %13 = vector.broadcast %12 : vector<1x128xf32> to vector<16x128xf32>
    %14 = arith.addf %11, %13 : vector<16x128xf32>
    %15 = arith.truncf %14 : vector<16x128xf32> to vector<16x128xbf16>
    %c0_11 = arith.constant 0 : index
    %c0_12 = arith.constant 0 : index
    %16 = vector.load %arg6[%c0_11, %c0_12] : memref<128x128xbf16, #tpu.memory_space<vmem>>, vector<128x128xbf16>
    %cst_13 = arith.constant dense<0.000000e+00> : vector<16x128xf32>
    %17 = tpu.matmul %15, %16, %cst_13 {dimension_numbers = #tpu.dot_dimension_numbers<[1], [0], [0], [1], [0, 0, 1, 1], [], []>} : vector<16x128xbf16>, vector<128x128xbf16>, vector<16x128xf32> -> vector<16x128xf32>
    %c0_14 = arith.constant 0 : index
    %c0_15 = arith.constant 0 : index
    %18 = vector.load %arg7[%c0_14, %c0_15] : memref<1x128xf32, #tpu.memory_space<vmem>>, vector<1x128xf32>
    %19 = vector.broadcast %18 : vector<1x128xf32> to vector<16x128xf32>
    %20 = arith.addf %17, %19 : vector<16x128xf32>
    %c0_16 = arith.constant 0 : index
    %c0_17 = arith.constant 0 : index
    %21 = vector.load %arg8[%c0_16, %c0_17] : memref<16x128xf32, #tpu.memory_space<vmem>>, vector<16x128xf32>
    tpu.vector_store %arg8[%c0_16, %c0_17], %20 {strides = array<i32>} : memref<16x128xf32, #tpu.memory_space<vmem>>, vector<16x128xf32>,
    return
  }
  func.func @transform_0(%arg0: i32) -> (i32, i32) {
    %c0_i32 = arith.constant 0 : i32
    %c0_i32_0 = arith.constant 0 : i32
    return %arg0, %c0_i32 : i32, i32
  }
  func.func @transform_1(%arg0: i32) -> (i32, i32) {
    %c0_i32 = arith.constant 0 : i32
    %c0_i32_0 = arith.constant 0 : i32
    %c0_i32_1 = arith.constant 0 : i32
    return %c0_i32, %c0_i32_0 : i32, i32
  }
  func.func @transform_2(%arg0: i32) -> (i32, i32) {
    %c0_i32 = arith.constant 0 : i32
    %c0_i32_0 = arith.constant 0 : i32
    %c0_i32_1 = arith.constant 0 : i32
    return %c0_i32, %c0_i32_0 : i32, i32
  }
  func.func @transform_3(%arg0: i32) -> (i32, i32) {
    %c0_i32 = arith.constant 0 : i32
    %c0_i32_0 = arith.constant 0 : i32
    %c0_i32_1 = arith.constant 0 : i32
    return %c0_i32, %c0_i32_0 : i32, i32
  }
  func.func @transform_4(%arg0: i32) -> (i32, i32) {
    %c0_i32 = arith.constant 0 : i32
    %c0_i32_0 = arith.constant 0 : i32
    %c0_i32_1 = arith.constant 0 : i32
    return %c0_i32, %c0_i32_0 : i32, i32
  }
  func.func @transform_5(%arg0: i32) -> (i32, i32) {
    %c0_i32 = arith.constant 0 : i32
    %c0_i32_0 = arith.constant 0 : i32
    %c0_i32_1 = arith.constant 0 : i32
    return %c0_i32, %c0_i32_0 : i32, i32
  }
  func.func @transform_6(%arg0: i32) -> (i32, i32) {
    %c0_i32 = arith.constant 0 : i32
    %c0_i32_0 = arith.constant 0 : i32
    %c0_i32_1 = arith.constant 0 : i32
    return %c0_i32, %c0_i32_0 : i32, i32
  }
  func.func @transform_7(%arg0: i32) -> (i32, i32) {
    %c0_i32 = arith.constant 0 : i32
    %c0_i32_0 = arith.constant 0 : i32
    return %arg0, %c0_i32 : i32, i32
  }
}

</mosaic_0001>

<bundles_post_ra>
// kernel: tpu_custom_call.1
= control target key start
LH: loop header
LB: loop body
LE: loop exit
PB: predicated region body
PF: predicated region fallthrough
CT: control target
= control target key end

     0   :  { %12 = vsyncpa [#allocation3], 0  ;;  %s793_s0 = inlined_call_operand.hbm [shape: f32[16,16], index: 0, kind: input, shape index: {}]   ;;  %s794_s1 = inlined_call_operand.hbm [shape: bf16[16,128], index: 1, kind: input, shape index: {}]   ;;  %s795_s2 = inlined_call_operand.vmem [shape: f32[1,128], index: 2, kind: input, shape index: {}]   ;;  %s796_s3 = inlined_call_operand.hbm [shape: bf16[128,128], index: 3, kind: input, shape index: {}]   ;;  %s797_s4 = inlined_call_operand.vmem [shape: f32[1,128], index: 4, kind: input, shape index: {}]   ;;  %s798_s5 = inlined_call_operand.hbm [shape: bf16[128,128], index: 5, kind: input, shape index: {}]   ;;  %s799_s6 = inlined_call_operand.vmem [shape: f32[1,128], index: 6, kind: input, shape index: {}]   ;;  %s800_s7 = inlined_call_operand.hbm [shape: f32[16,128], index: 7, kind: output, shape index: {}]  }
   0x1   :  { %13 = vsyncpa [#allocation6], 0 }
   0x2   :  { %14 = vsyncpa [#allocation9], 0 }
   0x3   :  { %15 = vsyncpa [#allocation4], 0  ;;  %s628_s24 = smov [#allocation5]   ;;  %s510_s28 = scalar_lea.hbm %s794_s1, 128 }
   0x4   :  { %s33_s25 = sshll.u32 %s628_s24, 4  ;;  %p511_p0 = scmp.ne.s32.totalorder %s794_s1, %s510_s28  ;;  %s34_s25 = int_to_ptr.vmem [resolvable:$true] %s33_s25 }
   0x5   :  { %p514_p1 = scmp.lt.u32.totalorder %s510_s28, %s794_s1 }
   0x7   :  { %p516_p2 = pnand %p514_p1, %p511_p0 }
   0x9   :  { %519 = shalt.err (!%p516_p2)
}
   0xa   :  { %s520_s10 = scalar_lea.vmem %s34_s25, 128  ;;  %p525_p4 = scmp.lt.s32.totalorder %s34_s25, %s34_s25 }
   0xb   :  { %p521_p3 = scmp.ne.s32.totalorder %s34_s25, %s520_s10  ;;  %p526_p5 = scmp.lt.s32.totalorder %s520_s10, %s520_s10 }
   0xd   :  { %p527_p6 = por %p526_p5, %p525_p4 }
   0xf   :  { %p528_p7 = pnand %p527_p6, %p521_p3 }
  0x11   :  { %531 = shalt.err (!%p528_p7)
}
  0x12   :  { %s629_s11 = smov 64   ;;  %s630_s12 = smov 4  }
  0x13   :  { %39 = dma.hbm_to_vmem [thread:$0]  %s794_s1, 128, %s34_s25, [#allocation6], %s629_s11, %s629_s11, %s630_s12  }
  0x14   :  { %s631_s15 = smov [#allocation2]   ;;  %s532_s19 = scalar_lea.hbm %s793_s0, 256 }
  0x15   :  { %s21_s16 = sshll.u32 %s631_s15, 4  ;;  %p533_p8 = scmp.ne.s32.totalorder %s793_s0, %s532_s19  ;;  %s22_s16 = int_to_ptr.vmem [resolvable:$true] %s21_s16 }
  0x16   :  { %p536_p9 = scmp.lt.u32.totalorder %s532_s19, %s793_s0 }
  0x18   :  { %p538_p10 = pnand %p536_p9, %p533_p8 }
  0x1a   :  { %541 = shalt.err (!%p538_p10)
}
  0x1b   :  { %s542_s24 = scalar_lea.vmem %s22_s16, 256  ;;  %p547_p12 = scmp.lt.s32.totalorder %s22_s16, %s22_s16 }
  0x1c   :  { %p543_p11 = scmp.ne.s32.totalorder %s22_s16, %s542_s24  ;;  %p548_p13 = scmp.lt.s32.totalorder %s542_s24, %s542_s24 }
  0x1e   :  { %p549_p0 = por %p548_p13, %p547_p12 }
  0x20   :  { %p550_p1 = pnand %p549_p0, %p543_p11 }
  0x22   :  { %553 = shalt.err (!%p550_p1)
}
  0x23   :  { %s632_s1 = smov 128   ;;  %s633_s25 = smov 8  }
  0x24   :  { %27 = dma.hbm_to_vmem [thread:$0]  %s793_s0, 256, %s22_s16, [#allocation3], %s632_s1, %s632_s1, %s633_s25  }
  0x25   :  { %s634_s28 = smov [#allocation7]   ;;  %s635_s30 = smov [#allocation8]  }
  0x26   :  { %s47_s29 = sshll.u32 %s634_s28, 4  ;;  %s61_s8 = sshll.u32 %s635_s30, 4  ;;  %s48_s29 = int_to_ptr.vmem [resolvable:$true] %s47_s29  ;;  %s709_s8 = int_to_ptr.vmem [resolvable:$true] %s61_s8 }
  0x27   :  { %s554_s13 = scalar_lea.hbm %s796_s3, 1024 }
  0x28   :  { %p555_p2 = scmp.ne.s32.totalorder %s796_s3, %s554_s13  ;;  %p558_p3 = scmp.lt.u32.totalorder %s554_s13, %s796_s3 }
  0x2a   :  { %p560_p4 = pnand %p558_p3, %p555_p2 }
  0x2c   :  { %563 = shalt.err (!%p560_p4)
}
  0x2d   :  { %s564_s0 = scalar_lea.vmem %s48_s29, 1024  ;;  %p569_p6 = scmp.lt.s32.totalorder %s48_s29, %s48_s29 }
  0x2e   :  { %p565_p5 = scmp.ne.s32.totalorder %s48_s29, %s564_s0  ;;  %p570_p7 = scmp.lt.s32.totalorder %s564_s0, %s564_s0 }
  0x30   :  { %p571_p8 = por %p570_p7, %p569_p6 }
  0x32   :  { %p572_p9 = pnand %p571_p8, %p565_p5 }
  0x34   :  { %575 = shalt.err (!%p572_p9)
}
  0x35   :  { %53 = dma.hbm_to_vmem [thread:$0]  %s796_s3, 1024, %s48_s29, [#allocation6], %s629_s11, %s629_s11, %s630_s12  }
  0x36   :  { %s576_s22 = scalar_lea.hbm %s798_s5, 1024 }
  0x37   :  { %p577_p10 = scmp.ne.s32.totalorder %s798_s5, %s576_s22  ;;  %p580_p11 = scmp.lt.u32.totalorder %s576_s22, %s798_s5 }
  0x39   :  { %p582_p12 = pnand %p580_p11, %p577_p10 }
  0x3b   :  { %585 = shalt.err (!%p582_p12)
}
  0x3c   :  { %s586_s28 = scalar_lea.vmem %s709_s8, 1024  ;;  %p591_p0 = scmp.lt.s32.totalorder %s709_s8, %s709_s8 }
  0x3d   :  { %p587_p13 = scmp.ne.s32.totalorder %s709_s8, %s586_s28  ;;  %p592_p1 = scmp.lt.s32.totalorder %s586_s28, %s586_s28 }
  0x3f   :  { %p593_p2 = por %p592_p1, %p591_p0 }
  0x41   :  { %p594_p3 = pnand %p593_p2, %p587_p13 }
  0x43   :  { %597 = shalt.err (!%p594_p3)
}
  0x44   :  { %67 = dma.hbm_to_vmem [thread:$0]  %s798_s5, 1024, %s709_s8, [#allocation9], %s629_s11, %s629_s11, %s630_s12  }
  0x45   :  { %620 = dma.done.wait [#allocation3], 256  }
  0x46   :  { %621 = vsyncadd [#allocation3], 4294967040 }
  0x47   :  { %622 = dma.done.wait [#allocation6], 1152  }
  0x48   :  { %623 = vsyncadd [#allocation6], 4294966144 }
  0x49   :  { %624 = dma.done.wait [#allocation9], 1024  }
  0x4a   :  { %625 = vsyncadd [#allocation9], 4294966272  ;;  %v636_v0 = vmov 0.0   ;;  %vm637_vm0 = vmmov 0   ;;  %v493_v1 = vld [vmem:[#allocation5] sm:$0xff]   ;;  %v83_v2 = vld [vmem:[#allocation2] sm:$0xff] }
  0x4b   :  { %436 = vmatprep.subr.bf16.mxu0 %v636_v0  ;;  %438 = vmatprep.mubr.msk.bf16.mxu0 %vm637_vm0, %v636_v0  ;;  %v84_v3 = vld [vmem:[#allocation2 + $0x8] sm:$0xff]  ;;  %vm101_vm1 = vcmask 130048   ;;  %v494_v5 = vld [vmem:[#allocation7] sm:$0xff]   ;;  %v495_v6 = vld [vmem:[#allocation7 + $0x8] sm:$0xff]   ;;  %s638_s9 = smov [#allocation10]  }
  0x4c   :  { %442 = vmatprep.subr.bf16.mxu1 %v636_v0  ;;  %458 = vmatprep.mubr.msk.bf16.mxu1 %vm637_vm0, %v636_v0  ;;  %v85_v4 = vpack.c.bf16 %v84_v3, %v83_v2  ;;  %v496_v7 = vld [vmem:[#allocation7 + $0x10] sm:$0xff]   ;;  %v497_v8 = vld [vmem:[#allocation7 + $0x18] sm:$0xff]   ;;  %v498_v9 = vld [vmem:[#allocation7 + $0x20] sm:$0xff]   ;;  %s381_s10 = sshll.u32 %s638_s9, 4  ;;  %s382_s10 = int_to_ptr.vmem [resolvable:$true] %s381_s10 }
  0x4d   :  { %437 = vmatpush3.bf16.msra.mxu0 %v493_v1  ;;  %443 = vmatpush3.bf16.msra.mxu1 %v494_v5  ;;  %v499_v10 = vld [vmem:[#allocation7 + $0x28] sm:$0xff]   ;;  %v500_v11 = vld [vmem:[#allocation7 + $0x30] sm:$0xff]   ;;  %v501_v12 = vld [vmem:[#allocation7 + $0x38] sm:$0xff]   ;;  %p603_p5 = scmp.lt.s32.totalorder %s382_s10, %s382_s10 }
  0x4e   :  { %462 = vmatprep.subr.bf16.mxu0 %v636_v0  ;;  %444 = vmatprep.subr.bf16.mxu1 %v636_v0  ;;  %v502_v13 = vld [vmem:[#allocation8] sm:$0xff]   ;;  %v503_v14 = vld [vmem:[#allocation8 + $0x8] sm:$0xff]   ;;  %v504_v15 = vld [vmem:[#allocation8 + $0x10] sm:$0xff]  }
  0x4f   :  { %v505_v16 = vld [vmem:[#allocation8 + $0x18] sm:$0xff]   ;;  %v506_v17 = vld [vmem:[#allocation8 + $0x20] sm:$0xff]   ;;  %v507_v18 = vld [vmem:[#allocation8 + $0x28] sm:$0xff]  }
  0x50   :  { %439 = vmatmul.mubr.msk.bf16.vlgmr.msra.gmra.mrb[0].mxu0 %vm101_vm1, %v85_v4  ;;  %v395_v19 = vld [vmem:[%s795_s2] ss:$0 sm:$0xff]  ;;  %v508_v29 = vld [vmem:[#allocation8 + $0x30] sm:$0xff]   ;;  %v509_v30 = vld [vmem:[#allocation8 + $0x38] sm:$0xff]  }
  0x51   :  { %478 = vmatprep.mubr.msk.bf16.mxu0 %vm637_vm0, %v636_v0  ;;  %445 = vmatpush3.bf16.msra.mxu1 %v495_v6  ;;  %v398_v31 = vld [vmem:[%s797_s4] ss:$0 sm:$0xff]  ;;  %s598_s4 = scalar_lea.vmem %s382_s10, 256 }
  0x52   :  { %446 = vmatprep.subr.bf16.mxu1 %v636_v0  ;;  %463 = vmatpush3.bf16.msra.mxu0 %v502_v13  ;;  %v407_v39 = vld [vmem:[%s799_s6] ss:$0 sm:$0xff]  ;;  %p599_p4 = scmp.ne.s32.totalorder %s382_s10, %s598_s4  ;;  %p604_p6 = scmp.lt.s32.totalorder %s598_s4, %s598_s4 }
  0x53   :  { %464 = vmatprep.subr.bf16.mxu0 %v636_v0 }
  0x54   :  { %p605_p7 = por %p604_p6, %p603_p5 }
  0x55   :  { %447 = vmatpush3.bf16.msra.mxu1 %v496_v7 }
  0x56   :  { %448 = vmatprep.subr.bf16.mxu1 %v636_v0  ;;  %465 = vmatpush3.bf16.msra.mxu0 %v503_v14  ;;  %p606_p8 = pnand %p605_p7, %p599_p4 }
  0x57   :  { %466 = vmatprep.subr.bf16.mxu0 %v636_v0 }
  0x59   :  { %449 = vmatpush3.bf16.msra.mxu1 %v497_v8 }
  0x5a   :  { %450 = vmatprep.subr.bf16.mxu1 %v636_v0  ;;  %467 = vmatpush3.bf16.msra.mxu0 %v504_v15 }
  0x5b   :  { %468 = vmatprep.subr.bf16.mxu0 %v636_v0 }
  0x5d   :  { %451 = vmatpush3.bf16.msra.mxu1 %v498_v9 }
  0x5e   :  { %452 = vmatprep.subr.bf16.mxu1 %v636_v0  ;;  %469 = vmatpush3.bf16.msra.mxu0 %v505_v16 }
  0x5f   :  { %470 = vmatprep.subr.bf16.mxu0 %v636_v0 }
  0x61   :  { %453 = vmatpush3.bf16.msra.mxu1 %v499_v10 }
  0x62   :  { %454 = vmatprep.subr.bf16.mxu1 %v636_v0  ;;  %471 = vmatpush3.bf16.msra.mxu0 %v506_v17 }
  0x63   :  { %472 = vmatprep.subr.bf16.mxu0 %v636_v0 }
  0x65   :  { %455 = vmatpush3.bf16.msra.mxu1 %v500_v11 }
  0x66   :  { %456 = vmatprep.subr.bf16.mxu1 %v636_v0  ;;  %473 = vmatpush3.bf16.msra.mxu0 %v507_v18 }
  0x67   :  { %474 = vmatprep.subr.bf16.mxu0 %v636_v0 }
  0x69   :  { %457 = vmatpush3.bf16.msra.mxu1 %v501_v12 }
  0x6a   :  { %475 = vmatpush3.bf16.msra.mxu0 %v508_v29 }
  0x6b   :  { %476 = vmatprep.subr.bf16.mxu0 %v636_v0 }
  0x6e   :  { %477 = vmatpush3.bf16.msra.mxu0 %v509_v30 }
 0x123   :  { %v139_v20 = vpop.f32.mrb[0].mxu0 }
 0x124   :  { %v140_v21 = vadd.f32 %v395_v19, %v139_v20  ;;  %v440_v22 = vpop.f32.mrb[1].mxu0 }
 0x125   :  { %v142_v23 = vpop.f32.mrb[2].mxu0 }
 0x126   :  { %v143_v24 = vadd.f32 %v395_v19, %v142_v23  ;;  %v441_v25 = vpop.f32.mrb[3].mxu0  ;;  %v146_v26 = vmax.f32 %v140_v21, 0.0 }
 0x128   :  { %v147_v27 = vmax.f32 %v143_v24, 0.0 }
 0x12a   :  { %v148_v28 = vpack.c.bf16 %v147_v27, %v146_v26 }
 0x12c   :  { %459 = vmatmul.mubr.bf16.vlgmr.msra.gmra.mrb[0].mxu1 %v148_v28 }
 0x1ff   :  { %v254_v32 = vpop.f32.mrb[0].mxu1 }
 0x200   :  { %v460_v33 = vpop.f32.mrb[1].mxu1  ;;  %v255_v35 = vadd.f32 %v398_v31, %v254_v32 }
 0x201   :  { %v257_v34 = vpop.f32.mrb[2].mxu1 }
 0x202   :  { %v258_v36 = vadd.f32 %v398_v31, %v257_v34  ;;  %v461_v37 = vpop.f32.mrb[3].mxu1 }
 0x204   :  { %v261_v38 = vpack.c.bf16 %v258_v36, %v255_v35 }
 0x206   :  { %479 = vmatmul.mubr.bf16.vlgmr.msra.gmra.mrb[4].mxu0 %v261_v38 }
 0x2d9   :  { %v367_v40 = vpop.f32.mrb[4].mxu0 }
 0x2da   :  { %v368_v41 = vadd.f32 %v407_v39, %v367_v40  ;;  %v480_v42 = vpop.f32.mrb[5].mxu0 }
 0x2db   :  { %v370_v43 = vpop.f32.mrb[6].mxu0 }
 0x2dc   :  { %374 = vst [vmem:[#allocation10] sm:$0xff] %v368_v41  ;;  %v371_v44 = vadd.f32 %v407_v39, %v370_v43  ;;  %v481_v45 = vpop.f32.mrb[7].mxu0 }
 0x2de   :  { %375 = vst [vmem:[#allocation10 + $0x8] sm:$0xff] %v371_v44 }
 0x2df   :  { %609 = shalt.err (!%p606_p8)
}
 0x2e0   :  { %s610_s14 = scalar_lea.hbm %s800_s7, 256 }
 0x2e1   :  { %p611_p9 = scmp.ne.s32.totalorder %s800_s7, %s610_s14  ;;  %p614_p10 = scmp.lt.u32.totalorder %s610_s14, %s800_s7 }
 0x2e3   :  { %p616_p11 = pnand %p614_p10, %p611_p9 }
 0x2e5   :  { %619 = shalt.err (!%p616_p11)
}
 0x2e6   :  { %387 = dma.vmem_to_hbm [thread:$0]  %s382_s10, 256, %s800_s7, [#allocation4], %s632_s1, %s632_s1, %s633_s25  }
 0x2e7   :  { %626 = dma.done.wait [#allocation4], 256  }
 0x2e8   :  { %627 = vsyncadd [#allocation4], 4294967040 }
 0x2e9   :  { %391 = vsyncpa [#allocation3], 1 }
 0x2ea   :  { %392 = vsyncpa [#allocation6], 1 }
 0x2eb   :  { %393 = vsyncpa [#allocation9], 1 }
 0x2ec   :  { %394 = vsyncpa [#allocation4], 1 }

// kernel: tpu_custom_call.1
= control target key start
LH: loop header
LB: loop body
LE: loop exit
PB: predicated region body
PF: predicated region fallthrough
CT: control target
= control target key end

     0   :  { %12 = vsyncpa [#allocation3], 0  ;;  %s793_s0 = inlined_call_operand.hbm [shape: f32[16,16], index: 0, kind: input, shape index: {}]   ;;  %s794_s1 = inlined_call_operand.hbm [shape: bf16[16,128], index: 1, kind: input, shape index: {}]   ;;  %s795_s2 = inlined_call_operand.vmem [shape: f32[1,128], index: 2, kind: input, shape index: {}]   ;;  %s796_s3 = inlined_call_operand.hbm [shape: bf16[128,128], index: 3, kind: input, shape index: {}]   ;;  %s797_s4 = inlined_call_operand.vmem [shape: f32[1,128], index: 4, kind: input, shape index: {}]   ;;  %s798_s5 = inlined_call_operand.hbm [shape: bf16[128,128], index: 5, kind: input, shape index: {}]   ;;  %s799_s6 = inlined_call_operand.vmem [shape: f32[1,128], index: 6, kind: input, shape index: {}]   ;;  %s800_s7 = inlined_call_operand.hbm [shape: f32[16,128], index: 7, kind: output, shape index: {}]  }
   0x1   :  { %13 = vsyncpa [#allocation6], 0 }
   0x2   :  { %14 = vsyncpa [#allocation9], 0 }
   0x3   :  { %15 = vsyncpa [#allocation4], 0  ;;  %s628_s24 = smov [#allocation5]   ;;  %s510_s28 = scalar_lea.hbm %s794_s1, 128 }
   0x4   :  { %s33_s25 = sshll.u32 %s628_s24, 4  ;;  %p511_p0 = scmp.ne.s32.totalorder %s794_s1, %s510_s28  ;;  %s34_s25 = int_to_ptr.vmem [resolvable:$true] %s33_s25 }
   0x5   :  { %p514_p1 = scmp.lt.u32.totalorder %s510_s28, %s794_s1 }
   0x7   :  { %p516_p2 = pnand %p514_p1, %p511_p0 }
   0x9   :  { %519 = shalt.err (!%p516_p2)
}
   0xa   :  { %s520_s10 = scalar_lea.vmem %s34_s25, 128  ;;  %p525_p4 = scmp.lt.s32.totalorder %s34_s25, %s34_s25 }
   0xb   :  { %p521_p3 = scmp.ne.s32.totalorder %s34_s25, %s520_s10  ;;  %p526_p5 = scmp.lt.s32.totalorder %s520_s10, %s520_s10 }
   0xd   :  { %p527_p6 = por %p526_p5, %p525_p4 }
   0xf   :  { %p528_p7 = pnand %p527_p6, %p521_p3 }
  0x11   :  { %531 = shalt.err (!%p528_p7)
}
  0x12   :  { %s629_s11 = smov 64   ;;  %s630_s12 = smov 4  }
  0x13   :  { %39 = dma.hbm_to_vmem [thread:$0]  %s794_s1, 128, %s34_s25, [#allocation6], %s629_s11, %s629_s11, %s630_s12  }
  0x14   :  { %s631_s15 = smov [#allocation2]   ;;  %s532_s19 = scalar_lea.hbm %s793_s0, 256 }
  0x15   :  { %s21_s16 = sshll.u32 %s631_s15, 4  ;;  %p533_p8 = scmp.ne.s32.totalorder %s793_s0, %s532_s19  ;;  %s22_s16 = int_to_ptr.vmem [resolvable:$true] %s21_s16 }
  0x16   :  { %p536_p9 = scmp.lt.u32.totalorder %s532_s19, %s793_s0 }
  0x18   :  { %p538_p10 = pnand %p536_p9, %p533_p8 }
  0x1a   :  { %541 = shalt.err (!%p538_p10)
}
  0x1b   :  { %s542_s24 = scalar_lea.vmem %s22_s16, 256  ;;  %p547_p12 = scmp.lt.s32.totalorder %s22_s16, %s22_s16 }
  0x1c   :  { %p543_p11 = scmp.ne.s32.totalorder %s22_s16, %s542_s24  ;;  %p548_p13 = scmp.lt.s32.totalorder %s542_s24, %s542_s24 }
  0x1e   :  { %p549_p0 = por %p548_p13, %p547_p12 }
  0x20   :  { %p550_p1 = pnand %p549_p0, %p543_p11 }
  0x22   :  { %553 = shalt.err (!%p550_p1)
}
  0x23   :  { %s632_s1 = smov 128   ;;  %s633_s25 = smov 8  }
  0x24   :  { %27 = dma.hbm_to_vmem [thread:$0]  %s793_s0, 256, %s22_s16, [#allocation3], %s632_s1, %s632_s1, %s633_s25  }
  0x25   :  { %s634_s28 = smov [#allocation7]   ;;  %s635_s30 = smov [#allocation8]  }
  0x26   :  { %s47_s29 = sshll.u32 %s634_s28, 4  ;;  %s61_s8 = sshll.u32 %s635_s30, 4  ;;  %s48_s29 = int_to_ptr.vmem [resolvable:$true] %s47_s29  ;;  %s709_s8 = int_to_ptr.vmem [resolvable:$true] %s61_s8 }
  0x27   :  { %s554_s13 = scalar_lea.hbm %s796_s3, 1024 }
  0x28   :  { %p555_p2 = scmp.ne.s32.totalorder %s796_s3, %s554_s13  ;;  %p558_p3 = scmp.lt.u32.totalorder %s554_s13, %s796_s3 }
  0x2a   :  { %p560_p4 = pnand %p558_p3, %p555_p2 }
  0x2c   :  { %563 = shalt.err (!%p560_p4)
}
  0x2d   :  { %s564_s0 = scalar_lea.vmem %s48_s29, 1024  ;;  %p569_p6 = scmp.lt.s32.totalorder %s48_s29, %s48_s29 }
  0x2e   :  { %p565_p5 = scmp.ne.s32.totalorder %s48_s29, %s564_s0  ;;  %p570_p7 = scmp.lt.s32.totalorder %s564_s0, %s564_s0 }
  0x30   :  { %p571_p8 = por %p570_p7, %p569_p6 }
  0x32   :  { %p572_p9 = pnand %p571_p8, %p565_p5 }
  0x34   :  { %575 = shalt.err (!%p572_p9)
}
  0x35   :  { %53 = dma.hbm_to_vmem [thread:$0]  %s796_s3, 1024, %s48_s29, [#allocation6], %s629_s11, %s629_s11, %s630_s12  }
  0x36   :  { %s576_s22 = scalar_lea.hbm %s798_s5, 1024 }
  0x37   :  { %p577_p10 = scmp.ne.s32.totalorder %s798_s5, %s576_s22  ;;  %p580_p11 = scmp.lt.u32.totalorder %s576_s22, %s798_s5 }
  0x39   :  { %p582_p12 = pnand %p580_p11, %p577_p10 }
  0x3b   :  { %585 = shalt.err (!%p582_p12)
}
  0x3c   :  { %s586_s28 = scalar_lea.vmem %s709_s8, 1024  ;;  %p591_p0 = scmp.lt.s32.totalorder %s709_s8, %s709_s8 }
  0x3d   :  { %p587_p13 = scmp.ne.s32.totalorder %s709_s8, %s586_s28  ;;  %p592_p1 = scmp.lt.s32.totalorder %s586_s28, %s586_s28 }
  0x3f   :  { %p593_p2 = por %p592_p1, %p591_p0 }
  0x41   :  { %p594_p3 = pnand %p593_p2, %p587_p13 }
  0x43   :  { %597 = shalt.err (!%p594_p3)
}
  0x44   :  { %67 = dma.hbm_to_vmem [thread:$0]  %s798_s5, 1024, %s709_s8, [#allocation9], %s629_s11, %s629_s11, %s630_s12  }
  0x45   :  { %620 = dma.done.wait [#allocation3], 256  }
  0x46   :  { %621 = vsyncadd [#allocation3], 4294967040 }
  0x47   :  { %622 = dma.done.wait [#allocation6], 1152  }
  0x48   :  { %623 = vsyncadd [#allocation6], 4294966144 }
  0x49   :  { %624 = dma.done.wait [#allocation9], 1024  }
  0x4a   :  { %625 = vsyncadd [#allocation9], 4294966272  ;;  %v636_v0 = vmov 0.0   ;;  %vm637_vm0 = vmmov 0   ;;  %v493_v1 = vld [vmem:[#allocation5] sm:$0xff]   ;;  %v83_v2 = vld [vmem:[#allocation2] sm:$0xff] }
  0x4b   :  { %436 = vmatprep.subr.bf16.mxu0 %v636_v0  ;;  %438 = vmatprep.mubr.msk.bf16.mxu0 %vm637_vm0, %v636_v0  ;;  %v84_v3 = vld [vmem:[#allocation2 + $0x8] sm:$0xff]  ;;  %vm101_vm1 = vcmask 130048   ;;  %v494_v5 = vld [vmem:[#allocation7] sm:$0xff]   ;;  %v495_v6 = vld [vmem:[#allocation7 + $0x8] sm:$0xff]   ;;  %s638_s9 = smov [#allocation10]  }
  0x4c   :  { %442 = vmatprep.subr.bf16.mxu1 %v636_v0  ;;  %458 = vmatprep.mubr.msk.bf16.mxu1 %vm637_vm0, %v636_v0  ;;  %v85_v4 = vpack.c.bf16 %v84_v3, %v83_v2  ;;  %v496_v7 = vld [vmem:[#allocation7 + $0x10] sm:$0xff]   ;;  %v497_v8 = vld [vmem:[#allocation7 + $0x18] sm:$0xff]   ;;  %v498_v9 = vld [vmem:[#allocation7 + $0x20] sm:$0xff]   ;;  %s381_s10 = sshll.u32 %s638_s9, 4  ;;  %s382_s10 = int_to_ptr.vmem [resolvable:$true] %s381_s10 }
  0x4d   :  { %437 = vmatpush3.bf16.msra.mxu0 %v493_v1  ;;  %443 = vmatpush3.bf16.msra.mxu1 %v494_v5  ;;  %v499_v10 = vld [vmem:[#allocation7 + $0x28] sm:$0xff]   ;;  %v500_v11 = vld [vmem:[#allocation7 + $0x30] sm:$0xff]   ;;  %v501_v12 = vld [vmem:[#allocation7 + $0x38] sm:$0xff]   ;;  %p603_p5 = scmp.lt.s32.totalorder %s382_s10, %s382_s10 }
  0x4e   :  { %462 = vmatprep.subr.bf16.mxu0 %v636_v0  ;;  %444 = vmatprep.subr.bf16.mxu1 %v636_v0  ;;  %v502_v13 = vld [vmem:[#allocation8] sm:$0xff]   ;;  %v503_v14 = vld [vmem:[#allocation8 + $0x8] sm:$0xff]   ;;  %v504_v15 = vld [vmem:[#allocation8 + $0x10] sm:$0xff]  }
  0x4f   :  { %v505_v16 = vld [vmem:[#allocation8 + $0x18] sm:$0xff]   ;;  %v506_v17 = vld [vmem:[#allocation8 + $0x20] sm:$0xff]   ;;  %v507_v18 = vld [vmem:[#allocation8 + $0x28] sm:$0xff]  }
  0x50   :  { %439 = vmatmul.mubr.msk.bf16.vlgmr.msra.gmra.mrb[0].mxu0 %vm101_vm1, %v85_v4  ;;  %v395_v19 = vld [vmem:[%s795_s2] ss:$0 sm:$0xff]  ;;  %v508_v29 = vld [vmem:[#allocation8 + $0x30] sm:$0xff]   ;;  %v509_v30 = vld [vmem:[#allocation8 + $0x38] sm:$0xff]  }
  0x51   :  { %478 = vmatprep.mubr.msk.bf16.mxu0 %vm637_vm0, %v636_v0  ;;  %445 = vmatpush3.bf16.msra.mxu1 %v495_v6  ;;  %v398_v31 = vld [vmem:[%s797_s4] ss:$0 sm:$0xff]  ;;  %s598_s4 = scalar_lea.vmem %s382_s10, 256 }
  0x52   :  { %446 = vmatprep.subr.bf16.mxu1 %v636_v0  ;;  %463 = vmatpush3.bf16.msra.mxu0 %v502_v13  ;;  %v407_v39 = vld [vmem:[%s799_s6] ss:$0 sm:$0xff]  ;;  %p599_p4 = scmp.ne.s32.totalorder %s382_s10, %s598_s4  ;;  %p604_p6 = scmp.lt.s32.totalorder %s598_s4, %s598_s4 }
  0x53   :  { %464 = vmatprep.subr.bf16.mxu0 %v636_v0 }
  0x54   :  { %p605_p7 = por %p604_p6, %p603_p5 }
  0x55   :  { %447 = vmatpush3.bf16.msra.mxu1 %v496_v7 }
  0x56   :  { %448 = vmatprep.subr.bf16.mxu1 %v636_v0  ;;  %465 = vmatpush3.bf16.msra.mxu0 %v503_v14  ;;  %p606_p8 = pnand %p605_p7, %p599_p4 }
  0x57   :  { %466 = vmatprep.subr.bf16.mxu0 %v636_v0 }
  0x59   :  { %449 = vmatpush3.bf16.msra.mxu1 %v497_v8 }
  0x5a   :  { %450 = vmatprep.subr.bf16.mxu1 %v636_v0  ;;  %467 = vmatpush3.bf16.msra.mxu0 %v504_v15 }
  0x5b   :  { %468 = vmatprep.subr.bf16.mxu0 %v636_v0 }
  0x5d   :  { %451 = vmatpush3.bf16.msra.mxu1 %v498_v9 }
  0x5e   :  { %452 = vmatprep.subr.bf16.mxu1 %v636_v0  ;;  %469 = vmatpush3.bf16.msra.mxu0 %v505_v16 }
  0x5f   :  { %470 = vmatprep.subr.bf16.mxu0 %v636_v0 }
  0x61   :  { %453 = vmatpush3.bf16.msra.mxu1 %v499_v10 }
  0x62   :  { %454 = vmatprep.subr.bf16.mxu1 %v636_v0  ;;  %471 = vmatpush3.bf16.msra.mxu0 %v506_v17 }
  0x63   :  { %472 = vmatprep.subr.bf16.mxu0 %v636_v0 }
  0x65   :  { %455 = vmatpush3.bf16.msra.mxu1 %v500_v11 }
  0x66   :  { %456 = vmatprep.subr.bf16.mxu1 %v636_v0  ;;  %473 = vmatpush3.bf16.msra.mxu0 %v507_v18 }
  0x67   :  { %474 = vmatprep.subr.bf16.mxu0 %v636_v0 }
  0x69   :  { %457 = vmatpush3.bf16.msra.mxu1 %v501_v12 }
  0x6a   :  { %475 = vmatpush3.bf16.msra.mxu0 %v508_v29 }
  0x6b   :  { %476 = vmatprep.subr.bf16.mxu0 %v636_v0 }
  0x6e   :  { %477 = vmatpush3.bf16.msra.mxu0 %v509_v30 }
 0x123   :  { %v139_v20 = vpop.f32.mrb[0].mxu0 }
 0x124   :  { %v140_v21 = vadd.f32 %v395_v19, %v139_v20  ;;  %v440_v22 = vpop.f32.mrb[1].mxu0 }
 0x125   :  { %v142_v23 = vpop.f32.mrb[2].mxu0 }
 0x126   :  { %v143_v24 = vadd.f32 %v395_v19, %v142_v23  ;;  %v441_v25 = vpop.f32.mrb[3].mxu0  ;;  %v146_v26 = vmax.f32 %v140_v21, 0.0 }
 0x128   :  { %v147_v27 = vmax.f32 %v143_v24, 0.0 }
 0x12a   :  { %v148_v28 = vpack.c.bf16 %v147_v27, %v146_v26 }
 0x12c   :  { %459 = vmatmul.mubr.bf16.vlgmr.msra.gmra.mrb[0].mxu1 %v148_v28 }
 0x1ff   :  { %v254_v32 = vpop.f32.mrb[0].mxu1 }
 0x200   :  { %v460_v33 = vpop.f32.mrb[1].mxu1  ;;  %v255_v35 = vadd.f32 %v398_v31, %v254_v32 }
 0x201   :  { %v257_v34 = vpop.f32.mrb[2].mxu1 }
 0x202   :  { %v258_v36 = vadd.f32 %v398_v31, %v257_v34  ;;  %v461_v37 = vpop.f32.mrb[3].mxu1 }
 0x204   :  { %v261_v38 = vpack.c.bf16 %v258_v36, %v255_v35 }
 0x206   :  { %479 = vmatmul.mubr.bf16.vlgmr.msra.gmra.mrb[4].mxu0 %v261_v38 }
 0x2d9   :  { %v367_v40 = vpop.f32.mrb[4].mxu0 }
 0x2da   :  { %v368_v41 = vadd.f32 %v407_v39, %v367_v40  ;;  %v480_v42 = vpop.f32.mrb[5].mxu0 }
 0x2db   :  { %v370_v43 = vpop.f32.mrb[6].mxu0 }
 0x2dc   :  { %374 = vst [vmem:[#allocation10] sm:$0xff] %v368_v41  ;;  %v371_v44 = vadd.f32 %v407_v39, %v370_v43  ;;  %v481_v45 = vpop.f32.mrb[7].mxu0 }
 0x2de   :  { %375 = vst [vmem:[#allocation10 + $0x8] sm:$0xff] %v371_v44 }
 0x2df   :  { %609 = shalt.err (!%p606_p8)
}
 0x2e0   :  { %s610_s14 = scalar_lea.hbm %s800_s7, 256 }
 0x2e1   :  { %p611_p9 = scmp.ne.s32.totalorder %s800_s7, %s610_s14  ;;  %p614_p10 = scmp.lt.u32.totalorder %s610_s14, %s800_s7 }
 0x2e3   :  { %p616_p11 = pnand %p614_p10, %p611_p9 }
 0x2e5   :  { %619 = shalt.err (!%p616_p11)
}
 0x2e6   :  { %387 = dma.vmem_to_hbm [thread:$0]  %s382_s10, 256, %s800_s7, [#allocation4], %s632_s1, %s632_s1, %s633_s25  }
 0x2e7   :  { %626 = dma.done.wait [#allocation4], 256  }
 0x2e8   :  { %627 = vsyncadd [#allocation4], 4294967040 }
 0x2e9   :  { %391 = vsyncpa [#allocation3], 1 }
 0x2ea   :  { %392 = vsyncpa [#allocation6], 1 }
 0x2eb   :  { %393 = vsyncpa [#allocation9], 1 }
 0x2ec   :  { %394 = vsyncpa [#allocation4], 1 }

</bundles_post_ra>
